<compile_context>
chip_gen: v7x
topology: tpu7x:2x2x1
jax: 0.10.0
libtpu: 0.0.40
codegen_flags: <defaults>
</compile_context>

<pallas_src>
import functools

import jax
import jax.numpy as jnp
from jax.experimental import pallas as pl
from jax.experimental.pallas import tpu as pltpu

_LANES = 128
_MAX_ROW_TILE = 4096  # (4096, 128) f32 = 2 MiB per input block


def _make_score_kernel(row_tile, rows_total):
    """Build the reduction kernel for static (row_tile, rows_total)."""
    mask_needed = (rows_total % row_tile) != 0

    def kernel(p_ref, t_ref, sse_ref, sae_ref):
        j = pl.program_id(0)

        @pl.when(j == 0)
        def _():
            sse_ref[...] = jnp.zeros_like(sse_ref)
            sae_ref[...] = jnp.zeros_like(sae_ref)

        diff = p_ref[...].astype(jnp.float32) - t_ref[...].astype(jnp.float32)

        if mask_needed:
            # Last grid step's block extends past rows_total; zero the padded
            # rows.  Compare+select is VPU filler under an HBM-bound loop.
            row = jax.lax.broadcasted_iota(jnp.int32, diff.shape, 0)
            diff = jnp.where(j * row_tile + row < rows_total, diff, 0.0)

        # Fold the (row_tile, 128) block into the (8, 128) accumulators with a
        # tile-aligned reshape + leading-axis sum: pure vreg-wise VALU adds,
        # no cross-lane/sublane (XLU) work, ~1 vld + 1 vst of accumulator
        # traffic per step.
        sq = (diff * diff).reshape(row_tile // 8, 8, _LANES)
        ab = jnp.abs(diff).reshape(row_tile // 8, 8, _LANES)
        sse_ref[...] += jnp.sum(sq, axis=0)
        sae_ref[...] += jnp.sum(ab, axis=0)

    return kernel


def _reduce_scores(p2d, t2d, row_tile):
    """Stream a [rows_total, 128] slab once; return (sum_sq_err, sum_abs_err)."""
    rows_total = p2d.shape[0]
    steps = pl.cdiv(rows_total, row_tile)

    in_spec = pl.BlockSpec((row_tile, _LANES), lambda j: (j, 0))
    # Constant index_map -> output blocks stay resident in VMEM across the
    # whole grid and are written back to HBM exactly once.
    out_spec = pl.BlockSpec((8, _LANES), lambda j: (0, 0))

    sse_t, sae_t = pl.pallas_call(
        _make_score_kernel(row_tile, rows_total),
        out_shape=(
            jax.ShapeDtypeStruct((8, _LANES), jnp.float32),
            jax.ShapeDtypeStruct((8, _LANES), jnp.float32),
        ),
        grid_spec=pltpu.PrefetchScalarGridSpec(
            num_scalar_prefetch=0,
            grid=(steps,),
            in_specs=[in_spec, in_spec],
            out_specs=(out_spec, out_spec),
        ),
        compiler_params=pltpu.CompilerParams(
            dimension_semantics=("arbitrary",),  # reduction axis
            vmem_limit_bytes=32 * 1024 * 1024,   # >= 2x headroom over ~8 MiB buffered
        ),
    )(p2d, t2d)
    # Tiny epilogue cross-lane reduce of the two (8,128) partials.
    return jnp.sum(sse_t), jnp.sum(sae_t)


@jax.jit
def _compute_scores(pred, target):
    """Returns (mse, mae) as f32 scalars."""
    flat_p = jnp.reshape(pred, (-1,))
    flat_t = jnp.reshape(target, (-1,))
    n = flat_p.shape[0]
    rows_total = n // _LANES
    rem = n - rows_total * _LANES

    # Kernel eligibility / tile selection (all static Python).
    f32_inputs = pred.dtype.itemsize == 4 and target.dtype.itemsize == 4
    if rows_total >= 32:
        row_tile = min(_MAX_ROW_TILE, (rows_total // 32) * 32)
        use_kernel = True
    elif rows_total >= 8 and f32_inputs:
        row_tile = (rows_total // 8) * 8
        use_kernel = True
    else:
        use_kernel = False  # tiny input: a kernel launch buys nothing

    sse = jnp.float32(0.0)
    sae = jnp.float32(0.0)

    if use_kernel:
        main = rows_total * _LANES
        if rem == 0:
            # Common case: pure shape change, no prefix-slice copy before the
            # kernel.  (For inputs whose trailing dim is already a multiple of
            # 128 this is layout-preserving; otherwise XLA fuses the one-time
            # relayout with the producer.)
            p2d = jnp.reshape(flat_p, (rows_total, _LANES))
            t2d = jnp.reshape(flat_t, (rows_total, _LANES))
        else:
            p2d = jnp.reshape(flat_p[:main], (rows_total, _LANES))
            t2d = jnp.reshape(flat_t[:main], (rows_total, _LANES))
        k_sse, k_sae = _reduce_scores(p2d, t2d, row_tile)
        sse = sse + k_sse
        sae = sae + k_sae
        if rem:
            # Sub-row remainder (< 128 elements): tiny plain-JAX reduction.
            dt = flat_p[main:].astype(jnp.float32) - flat_t[main:].astype(jnp.float32)
            sse = sse + jnp.sum(dt * dt)
            sae = sae + jnp.sum(jnp.abs(dt))
    else:
        dt = flat_p.astype(jnp.float32) - flat_t.astype(jnp.float32)
        sse = jnp.sum(dt * dt)
        sae = jnp.sum(jnp.abs(dt))

    denom = jnp.float32(n)
    return sse / denom, sae / denom


class ScoreListPallas:
    """JAX/Pallas equivalent of ScoreList with config scores = [MSELoss, L1Loss]."""

    def __init__(self):
        # Deterministic synthetic config (the PyTorch module eval()s score
        # class names from a config file; we fix two scalar scores).
        self.score_names = ["MSELoss", "L1Loss"]

    def __call__(self, pred, target, **kwargs) -> dict:
        mse, mae = _compute_scores(pred, target)
        mse, mae = jax.block_until_ready((mse, mae))
        # Matches PyTorch: s.item() -> python float per score name.
        return {
            "MSELoss/score": float(mse),
            "L1Loss/score": float(mae),
        }


if __name__ == "__main__":
    scorer = ScoreListPallas()
    key = jax.random.PRNGKey(0)

    # Case 1: small NCHW, numel divisible by 128 (no-copy path, single step).
    k1, k2, k3, k4 = jax.random.split(key, 4)
    pred = jax.random.normal(k1, (2, 4, 16, 16), dtype=jnp.float32)
    target = jax.random.normal(k2, (2, 4, 16, 16), dtype=jnp.float32)
    out = scorer(pred, target)
    ref_mse = float(jnp.mean((pred - target) ** 2))
    ref_mae = float(jnp.mean(jnp.abs(pred - target)))
    assert abs(out["MSELoss/score"] - ref_mse) < 1e-5
    assert abs(out["L1Loss/score"] - ref_mae) < 1e-5

    # Case 2: ragged shape exercising the masked last block + sub-row tail.
    pred2 = jax.random.normal(k3, (3, 5, 40, 40), dtype=jnp.float32)
    target2 = jax.random.normal(k4, (3, 5, 40, 40), dtype=jnp.float32)
    out2 = scorer(pred2, target2)
    ref_mse2 = float(jnp.mean((pred2 - target2) ** 2))
    ref_mae2 = float(jnp.mean(jnp.abs(pred2 - target2)))
    assert abs(out2["MSELoss/score"] - ref_mse2) < 1e-5 * max(1.0, abs(ref_mse2))
    assert abs(out2["L1Loss/score"] - ref_mae2) < 1e-5 * max(1.0, abs(ref_mae2))

    print("KERNEL_OK")
</pallas_src>

<mosaic_0001>
module attributes {stable_mosaic.version = 11 : i64} {
  func.func @kernel(%arg0: i32, %arg1: memref<16x128xf32, #tpu.memory_space<vmem>>, %arg2: memref<16x128xf32, #tpu.memory_space<vmem>>, %arg3: memref<8x128xf32, #tpu.memory_space<vmem>>, %arg4: memref<8x128xf32, #tpu.memory_space<vmem>>) attributes {dimension_semantics = [#tpu.dimension_semantics<arbitrary>], iteration_bounds = array<i64: 1>, scalar_prefetch = 0 : i64, scratch_operands = 0 : i64, tpu.core_type = #tpu.core_type<tc>, window_params = [{transform_indices = @transform_0, window_bounds = array<i64: 16, 128>}, {transform_indices = @transform_1, window_bounds = array<i64: 16, 128>}, {pipeline_mode = #tpu.pipeline_mode<synchronous>, transform_indices = @transform_2, window_bounds = array<i64: 8, 128>}, {pipeline_mode = #tpu.pipeline_mode<synchronous>, transform_indices = @transform_3, window_bounds = array<i64: 8, 128>}]} {
    %c0_i32 = arith.constant 0 : i32
    %0 = arith.cmpi eq, %arg0, %c0_i32 : i32
    %1 = arith.extui %0 : i1 to i32
    %c0_i32_0 = arith.constant 0 : i32
    %2 = arith.cmpi ne, %1, %c0_i32_0 : i32
    scf.if %2 {
      %cst_13 = arith.constant 0.000000e+00 : f32
      %18 = vector.broadcast %cst_13 : f32 to vector<8x128xf32>
      %c0_14 = arith.constant 0 : index
      %c0_15 = arith.constant 0 : index
      %19 = vector.load %arg3[%c0_14, %c0_15] : memref<8x128xf32, #tpu.memory_space<vmem>>, vector<8x128xf32>
      tpu.vector_store %arg3[%c0_14, %c0_15], %18 {strides = array<i32>} : memref<8x128xf32, #tpu.memory_space<vmem>>, vector<8x128xf32>,
      %cst_16 = arith.constant 0.000000e+00 : f32
      %20 = vector.broadcast %cst_16 : f32 to vector<8x128xf32>
      %c0_17 = arith.constant 0 : index
      %c0_18 = arith.constant 0 : index
      %21 = vector.load %arg4[%c0_17, %c0_18] : memref<8x128xf32, #tpu.memory_space<vmem>>, vector<8x128xf32>
      tpu.vector_store %arg4[%c0_17, %c0_18], %20 {strides = array<i32>} : memref<8x128xf32, #tpu.memory_space<vmem>>, vector<8x128xf32>,
    } else {
    }
    %c0 = arith.constant 0 : index
    %c0_1 = arith.constant 0 : index
    %3 = vector.load %arg1[%c0, %c0_1] : memref<16x128xf32, #tpu.memory_space<vmem>>, vector<16x128xf32>
    %c0_2 = arith.constant 0 : index
    %c0_3 = arith.constant 0 : index
    %4 = vector.load %arg2[%c0_2, %c0_3] : memref<16x128xf32, #tpu.memory_space<vmem>>, vector<16x128xf32>
    %5 = arith.subf %3, %4 : vector<16x128xf32>
    %6 = arith.mulf %5, %5 : vector<16x128xf32>
    %7 = vector.shape_cast %6 : vector<16x128xf32> to vector<2x8x128xf32>
    %8 = math.absf %5 : vector<16x128xf32>
    %9 = vector.shape_cast %8 : vector<16x128xf32> to vector<2x8x128xf32>
    %c0_4 = arith.constant 0 : index
    %c0_5 = arith.constant 0 : index
    %10 = vector.load %arg3[%c0_4, %c0_5] : memref<8x128xf32, #tpu.memory_space<vmem>>, vector<8x128xf32>
    %cst = arith.constant dense<0.000000e+00> : vector<8x128xf32>
    %11 = vector.multi_reduction <add>, %7, %cst [0] : vector<2x8x128xf32> to vector<8x128xf32>
    %12 = arith.addf %10, %11 : vector<8x128xf32>
    %c0_6 = arith.constant 0 : index
    %c0_7 = arith.constant 0 : index
    %13 = vector.load %arg3[%c0_6, %c0_7] : memref<8x128xf32, #tpu.memory_space<vmem>>, vector<8x128xf32>
    tpu.vector_store %arg3[%c0_6, %c0_7], %12 {strides = array<i32>} : memref<8x128xf32, #tpu.memory_space<vmem>>, vector<8x128xf32>,
    %c0_8 = arith.constant 0 : index
    %c0_9 = arith.constant 0 : index
    %14 = vector.load %arg4[%c0_8, %c0_9] : memref<8x128xf32, #tpu.memory_space<vmem>>, vector<8x128xf32>
    %cst_10 = arith.constant dense<0.000000e+00> : vector<8x128xf32>
    %15 = vector.multi_reduction <add>, %9, %cst_10 [0] : vector<2x8x128xf32> to vector<8x128xf32>
    %16 = arith.addf %14, %15 : vector<8x128xf32>
    %c0_11 = arith.constant 0 : index
    %c0_12 = arith.constant 0 : index
    %17 = vector.load %arg4[%c0_11, %c0_12] : memref<8x128xf32, #tpu.memory_space<vmem>>, vector<8x128xf32>
    tpu.vector_store %arg4[%c0_11, %c0_12], %16 {strides = array<i32>} : memref<8x128xf32, #tpu.memory_space<vmem>>, vector<8x128xf32>,
    return
  }
  func.func @transform_0(%arg0: i32) -> (i32, i32) {
    %c0_i32 = arith.constant 0 : i32
    %c0_i32_0 = arith.constant 0 : i32
    return %arg0, %c0_i32 : i32, i32
  }
  func.func @transform_1(%arg0: i32) -> (i32, i32) {
    %c0_i32 = arith.constant 0 : i32
    %c0_i32_0 = arith.constant 0 : i32
    return %arg0, %c0_i32 : i32, i32
  }
  func.func @transform_2(%arg0: i32) -> (i32, i32) {
    %c0_i32 = arith.constant 0 : i32
    %c0_i32_0 = arith.constant 0 : i32
    %c0_i32_1 = arith.constant 0 : i32
    return %c0_i32, %c0_i32_0 : i32, i32
  }
  func.func @transform_3(%arg0: i32) -> (i32, i32) {
    %c0_i32 = arith.constant 0 : i32
    %c0_i32_0 = arith.constant 0 : i32
    %c0_i32_1 = arith.constant 0 : i32
    return %c0_i32, %c0_i32_0 : i32, i32
  }
}

</mosaic_0001>

<bundles_post_ra>
// kernel: _compute_scores.1
= control target key start
LH: loop header
LB: loop body
LE: loop exit
PB: predicated region body
PF: predicated region fallthrough
CT: control target
= control target key end

     0   :  { %s84_s0 = inlined_call_operand.vmem [shape: f32[16,128], index: 0, kind: input, shape index: {}]   ;;  %s85_s1 = inlined_call_operand.vmem [shape: f32[16,128], index: 1, kind: input, shape index: {}]   ;;  %s86_s2 = inlined_call_operand.vmem [shape: f32[8,128], index: 2, kind: output, shape index: {0}]   ;;  %s87_s3 = inlined_call_operand.vmem [shape: f32[8,128], index: 3, kind: output, shape index: {1}]  }
   0x1   :  { %v19_v0 = vld [vmem:[%s84_s0] sm:$0xff]  ;;  %v20_v1 = vld [vmem:[%s84_s0 + $0x8] sm:$0xff] }
   0x2   :  { %v21_v2 = vld [vmem:[%s85_s1] sm:$0xff]  ;;  %v22_v3 = vld [vmem:[%s85_s1 + $0x8] sm:$0xff] }
   0x3   :  { %v23_v4 = vsub.f32 %v19_v0, %v21_v2  ;;  %v24_v5 = vsub.f32 %v20_v1, %v22_v3 }
   0x5   :  { %v25_v6 = vmul.f32 %v23_v4, %v23_v4  ;;  %v27_v7 = vand.u32 2147483647, %v23_v4  ;;  %v26_v8 = vmul.f32 %v24_v5, %v24_v5  ;;  %v28_v9 = vand.u32 2147483647, %v24_v5 }
   0x7   :  { %v30_v10 = vadd.f32 %v26_v8, %v25_v6  ;;  %v34_v11 = vadd.f32 %v28_v9, %v27_v7 }
   0x9   :  { %32 = vst [vmem:[%s86_s2] sm:$0xff] %v30_v10  ;;  %36 = vst [vmem:[%s87_s3] sm:$0xff] %v34_v11 }

</bundles_post_ra>
